<compile_context>
chip_gen: v6e
topology: v6e:2x2x1
jax: 0.10.0
libtpu: 0.0.40
codegen_flags: <defaults>
</compile_context>

<pallas_src>
import jax
import jax.numpy as jnp
from jax import lax
from jax.experimental import pallas as pl
from jax.experimental.pallas import tpu as pltpu

# ---------------- model dims (small, consistent with an image classifier) ----
B = 2            # batch
C_IN = 4         # input channels
H = W = 16       # spatial
C_MID = 32       # conv output channels
NUM_CLASSES = 10
KH = KW = 3      # conv kernel

K_RAW = KH * KW * C_IN      # 36  : im2col contraction dim (no explicit pad;
                            #       Mosaic lane-pads on the input DMA)
NC_PAD = 128                # lane-dense padded classifier width
ROWS = B * H * W            # 512 : all batch rows in one matmul


def backbone_kernel(x_ref, wc_ref, bc_ref, pool_ref, wfc_ref, bfc_ref, out_ref):
    """Entire batch in one grid-less step; everything resident in VMEM.

    x_ref    : (ROWS, K_RAW)    im2col activations (un-padded K)
    wc_ref   : (K_RAW, C_MID)   conv weight as a matmul operand
    bc_ref   : (1, C_MID)       conv bias
    pool_ref : (B, ROWS)        block-diagonal mean-pool matrix
    wfc_ref  : (C_MID, NC_PAD)  classifier weight (class dim zero-padded)
    bfc_ref  : (1, NC_PAD)      classifier bias (zero-padded)
    out_ref  : (B, NC_PAD)      lane-dense logits
    """
    # Conv as a single im2col matmul on the MXU (one weight push, one drain).
    y = jnp.dot(x_ref[...], wc_ref[...], preferred_element_type=jnp.float32)
    # bias + ReLU
    y = jnp.maximum(y + bc_ref[...], 0.0)                        # (ROWS, C_MID)
    # Global average pool expressed as a matmul: no in-kernel reshapes or
    # cross-lane reductions needed.
    pooled = jnp.dot(pool_ref[...], y, preferred_element_type=jnp.float32)  # (B, C_MID)
    # Classifier head (lane-dense padded output -> unmasked stores).
    logits = jnp.dot(pooled, wfc_ref[...],
                     preferred_element_type=jnp.float32) + bfc_ref[...]
    out_ref[...] = logits.astype(out_ref.dtype)


def prepare_params(w_conv, b_conv, w_fc, b_fc):
    """One-time, input-independent operand prep (hoisted out of the forward)."""
    # conv_general_dilated_patches emits features ordered (c_in slow, kh, kw fast)
    # -> permute HWIO weight to (C_IN, KH, KW, C_MID) before flattening K.
    wc = jnp.transpose(w_conv, (2, 0, 1, 3)).reshape(K_RAW, C_MID)
    bc = b_conv.reshape(1, C_MID)
    # Block-diagonal averaging matrix: global mean pool as a matmul.
    pool = jnp.repeat(jnp.eye(B, dtype=jnp.float32), H * W, axis=1) / float(H * W)
    # Classifier padded to a lane-dense 128-wide output.
    wfc = jnp.pad(w_fc, ((0, 0), (0, NC_PAD - NUM_CLASSES)))
    bfc = jnp.pad(b_fc.reshape(1, NUM_CLASSES), ((0, 0), (0, NC_PAD - NUM_CLASSES)))
    return wc, bc, pool, wfc, bfc


@jax.jit
def custom_model_forward(x_nchw, wc, bc, pool, wfc, bfc):
    """x_nchw: (B, C_IN, H, W) float32 -> logits (B, NUM_CLASSES) float32."""
    # NCHW -> NHWC, then a single im2col op (replaces 9 slices + concat + pad).
    # HIGHEST precision keeps the identity-kernel patch extraction exact in f32.
    x_nhwc = jnp.transpose(x_nchw, (0, 2, 3, 1))
    patches = lax.conv_general_dilated_patches(
        x_nhwc, (KH, KW), (1, 1), "SAME",
        dimension_numbers=("NHWC", "HWIO", "NHWC"),
        precision=lax.Precision.HIGHEST)                  # (B, H, W, K_RAW)
    x_im2col = patches.reshape(ROWS, K_RAW)               # row index = (b, h, w)

    # Single kernel invocation, no grid: every operand is a full VMEM block.
    in_specs = [pl.BlockSpec(memory_space=pltpu.MemorySpace.VMEM)
                for _ in range(6)]
    logits_pad = pl.pallas_call(
        backbone_kernel,
        out_shape=jax.ShapeDtypeStruct((B, NC_PAD), jnp.float32),
        in_specs=in_specs,
        out_specs=pl.BlockSpec(memory_space=pltpu.MemorySpace.VMEM),
        compiler_params=pltpu.CompilerParams(
            # Allow XLA to fuse the activation's layout chain into the kernel
            # input instead of materializing it in HBM; the other operands are
            # pre-built constants.
            allow_input_fusion=[True, False, False, False, False, False]),
    )(x_im2col, wc, bc, pool, wfc, bfc)

    return logits_pad[:, :NUM_CLASSES]


def _reference(x_nchw, w_conv, b_conv, w_fc, b_fc):
    """Pure-JAX reference for a sanity check."""
    x = jnp.transpose(x_nchw, (0, 2, 3, 1))
    y = jax.lax.conv_general_dilated(
        x, w_conv, window_strides=(1, 1), padding="SAME",
        dimension_numbers=("NHWC", "HWIO", "NHWC"))
    y = jax.nn.relu(y + b_conv)
    pooled = jnp.mean(y, axis=(1, 2))
    return pooled @ w_fc + b_fc


if __name__ == "__main__":
    key = jax.random.PRNGKey(0)
    kx, kw1, kb1, kw2, kb2 = jax.random.split(key, 5)

    x = jax.random.normal(kx, (B, C_IN, H, W), dtype=jnp.float32)
    w_conv = jax.random.normal(kw1, (KH, KW, C_IN, C_MID), jnp.float32) * 0.1
    b_conv = jax.random.normal(kb1, (C_MID,), jnp.float32) * 0.01
    w_fc = jax.random.normal(kw2, (C_MID, NUM_CLASSES), jnp.float32) * 0.1
    b_fc = jax.random.normal(kb2, (NUM_CLASSES,), jnp.float32) * 0.01

    # One-time, input-independent operand prep (not rebuilt per forward call).
    params = jax.block_until_ready(prepare_params(w_conv, b_conv, w_fc, b_fc))

    out = custom_model_forward(x, *params)
    out = jax.block_until_ready(out)

    ref = _reference(x, w_conv, b_conv, w_fc, b_fc)
    assert out.shape == (B, NUM_CLASSES)
    assert jnp.allclose(out, ref, atol=1e-4, rtol=1e-4), "mismatch vs reference"

    print("KERNEL_OK")
</pallas_src>

<mosaic_0001>
module attributes {stable_mosaic.version = 11 : i64} {
  func.func @backbone_kernel(%arg0: memref<512x36xf32, #tpu.memory_space<vmem>>, %arg1: memref<36x32xf32, #tpu.memory_space<vmem>>, %arg2: memref<1x32xf32, #tpu.memory_space<vmem>>, %arg3: memref<2x512xf32, #tpu.memory_space<vmem>>, %arg4: memref<32x128xf32, #tpu.memory_space<vmem>>, %arg5: memref<1x128xf32, #tpu.memory_space<vmem>>, %arg6: memref<2x128xf32, #tpu.memory_space<vmem>>) attributes {dimension_semantics = [], scalar_prefetch = 0 : i64, scratch_operands = 0 : i64, tpu.core_type = #tpu.core_type<tc>} {
    %c0 = arith.constant 0 : index
    %c0_0 = arith.constant 0 : index
    %0 = vector.load %arg0[%c0, %c0_0] : memref<512x36xf32, #tpu.memory_space<vmem>>, vector<512x36xf32>
    %c0_1 = arith.constant 0 : index
    %c0_2 = arith.constant 0 : index
    %1 = vector.load %arg1[%c0_1, %c0_2] : memref<36x32xf32, #tpu.memory_space<vmem>>, vector<36x32xf32>
    %cst = arith.constant dense<0.000000e+00> : vector<512x32xf32>
    %2 = tpu.matmul %0, %1, %cst {dimension_numbers = #tpu.dot_dimension_numbers<[1], [0], [0], [1], [0, 0, 1, 1], [], []>} : vector<512x36xf32>, vector<36x32xf32>, vector<512x32xf32> -> vector<512x32xf32>
    %c0_3 = arith.constant 0 : index
    %c0_4 = arith.constant 0 : index
    %3 = vector.load %arg2[%c0_3, %c0_4] : memref<1x32xf32, #tpu.memory_space<vmem>>, vector<1x32xf32>
    %4 = vector.broadcast %3 : vector<1x32xf32> to vector<512x32xf32>
    %5 = arith.addf %2, %4 : vector<512x32xf32>
    %cst_5 = arith.constant 0.000000e+00 : f32
    %6 = vector.broadcast %cst_5 : f32 to vector<512x32xf32>
    %7 = arith.maximumf %5, %6 : vector<512x32xf32>
    %c0_6 = arith.constant 0 : index
    %c0_7 = arith.constant 0 : index
    %8 = vector.load %arg3[%c0_6, %c0_7] : memref<2x512xf32, #tpu.memory_space<vmem>>, vector<2x512xf32>
    %cst_8 = arith.constant dense<0.000000e+00> : vector<2x32xf32>
    %9 = tpu.matmul %8, %7, %cst_8 {dimension_numbers = #tpu.dot_dimension_numbers<[1], [0], [0], [1], [0, 0, 1, 1], [], []>} : vector<2x512xf32>, vector<512x32xf32>, vector<2x32xf32> -> vector<2x32xf32>
    %c0_9 = arith.constant 0 : index
    %c0_10 = arith.constant 0 : index
    %10 = vector.load %arg4[%c0_9, %c0_10] : memref<32x128xf32, #tpu.memory_space<vmem>>, vector<32x128xf32>
    %cst_11 = arith.constant dense<0.000000e+00> : vector<2x128xf32>
    %11 = tpu.matmul %9, %10, %cst_11 {dimension_numbers = #tpu.dot_dimension_numbers<[1], [0], [0], [1], [0, 0, 1, 1], [], []>} : vector<2x32xf32>, vector<32x128xf32>, vector<2x128xf32> -> vector<2x128xf32>
    %c0_12 = arith.constant 0 : index
    %c0_13 = arith.constant 0 : index
    %12 = vector.load %arg5[%c0_12, %c0_13] : memref<1x128xf32, #tpu.memory_space<vmem>>, vector<1x128xf32>
    %13 = vector.broadcast %12 : vector<1x128xf32> to vector<2x128xf32>
    %14 = arith.addf %11, %13 : vector<2x128xf32>
    %c0_14 = arith.constant 0 : index
    %c0_15 = arith.constant 0 : index
    %15 = vector.load %arg6[%c0_14, %c0_15] : memref<2x128xf32, #tpu.memory_space<vmem>>, vector<2x128xf32>
    tpu.vector_store %arg6[%c0_14, %c0_15], %14 {strides = array<i32>} : memref<2x128xf32, #tpu.memory_space<vmem>>, vector<2x128xf32>,
    return
  }
}

</mosaic_0001>

<bundles_post_ra>
// kernel: custom_model_forward.1
= control target key start
LH: loop header
LB: loop body
LE: loop exit
PB: predicated region body
PF: predicated region fallthrough
CT: control target
= control target key end

     0   :  { %vm293_vm0 = vcmask 1043456   ;;  %vm100_vm1 = vcmask 293888   ;;  %s1908_s0 = inlined_call_operand.vmem [shape: f32[512,36], index: 0, kind: input, shape index: {}]   ;;  %s1909_s1 = inlined_call_operand.vmem [shape: f32[36,32], index: 1, kind: input, shape index: {}]   ;;  %s1910_s2 = inlined_call_operand.vmem [shape: f32[1,32], index: 2, kind: input, shape index: {}]   ;;  %s1911_s3 = inlined_call_operand.vmem [shape: f32[2,512], index: 3, kind: input, shape index: {}]   ;;  %s1912_s4 = inlined_call_operand.vmem [shape: f32[32,128], index: 4, kind: input, shape index: {}]   ;;  %s1913_s5 = inlined_call_operand.vmem [shape: f32[1,128], index: 5, kind: input, shape index: {}]   ;;  %s1914_s6 = inlined_call_operand.hbm [shape: f32[2,128], index: 6, kind: output, shape index: {}]  }
   0x1   :  { %v92_v0 = vld [vmem:[%s1909_s1 + $0x20] sm:$0xf]  ;;  %v91_v1 = vld [vmem:[%s1909_s1 + $0x18] sm:$0xff]  ;;  %v90_v3 = vld [vmem:[%s1909_s1 + $0x10] sm:$0xff] }
   0x2   :  { %1221 = vmatprep.subr.msk.mxu0 %vm293_vm0, %v92_v0  ;;  %v24_v2 = vld [vmem:[%s1908_s0] sm:$0xff]  ;;  %1338 = vmatprep.subr.msk.mxu1 %vm293_vm0, %v92_v0  ;;  %v89_v4 = vld [vmem:[%s1909_s1 + $0x8] sm:$0xff]  ;;  %v26_v7 = vld [vmem:[%s1908_s0 + $0x10] sm:$0xff] }
   0x3   :  { %1222 = vmatpush3.msk.msra.mxu0 %vm293_vm0, %v92_v0  ;;  %1231 = vmatprep.mubr.msk.f32.mxu0 %vm100_vm1, %v24_v2  ;;  %v88_v5 = vld [vmem:[%s1909_s1] sm:$0xff]  ;;  %v25_v6 = vld [vmem:[%s1908_s0 + $0x8] sm:$0xff]  ;;  %v27_v9 = vld [vmem:[%s1908_s0 + $0x18] sm:$0xff] }
   0x4   :  { %1223 = vmatprep.subr.mxu0 %v91_v1  ;;  %1343 = vmatpush3.msk.msra.mxu1 %vm293_vm0, %v92_v0  ;;  %v68_v8 = vld [vmem:[%s1908_s0 + $0x160] sm:$0xff]  ;;  %v69_v10 = vld [vmem:[%s1908_s0 + $0x168] sm:$0xff]  ;;  %v70_v11 = vld [vmem:[%s1908_s0 + $0x170] sm:$0xff] }
   0x5   :  { %1224 = vmatpush3.msra.mxu0 %v91_v1  ;;  %1339 = vmatprep.subr.mxu1 %v91_v1  ;;  %v28_v12 = vld [vmem:[%s1908_s0 + $0x20] sm:$0xff]  ;;  %v71_v13 = vld [vmem:[%s1908_s0 + $0x178] sm:$0xff]  ;;  %v29_v15 = vld [vmem:[%s1908_s0 + $0x28] sm:$0xff] }
   0x6   :  { %1225 = vmatprep.subr.mxu0 %v90_v3  ;;  %1344 = vmatpush3.msra.mxu1 %v91_v1  ;;  %v72_v14 = vld [vmem:[%s1908_s0 + $0x180] sm:$0xff]  ;;  %v30_v16 = vld [vmem:[%s1908_s0 + $0x30] sm:$0xff]  ;;  %v73_v17 = vld [vmem:[%s1908_s0 + $0x188] sm:$0xff] }
   0x7   :  { %1226 = vmatpush3.msra.mxu0 %v90_v3  ;;  %1340 = vmatprep.subr.mxu1 %v90_v3  ;;  %v74_v18 = vld [vmem:[%s1908_s0 + $0x190] sm:$0xff]  ;;  %v31_v19 = vld [vmem:[%s1908_s0 + $0x38] sm:$0xff]  ;;  %v32_v20 = vld [vmem:[%s1908_s0 + $0x40] sm:$0xff] }
   0x8   :  { %1227 = vmatprep.subr.mxu0 %v89_v4  ;;  %1345 = vmatpush3.msra.mxu1 %v90_v3  ;;  %v75_v21 = vld [vmem:[%s1908_s0 + $0x198] sm:$0xff]  ;;  %v76_v22 = vld [vmem:[%s1908_s0 + $0x1a0] sm:$0xff] }
   0x9   :  { %1228 = vmatpush3.msra.mxu0 %v89_v4  ;;  %1341 = vmatprep.subr.mxu1 %v89_v4 }
   0xa   :  { %1229 = vmatprep.subr.mxu0 %v88_v5  ;;  %1346 = vmatpush3.msra.mxu1 %v89_v4 }
   0xb   :  { %1230 = vmatpush3.msra.mxu0 %v88_v5  ;;  %1342 = vmatprep.subr.mxu1 %v88_v5 }
   0xc   :  { %1232 = vmatmul.mubr.msk.f32.vlgmr.msra.gmra.mxu0 %vm100_vm1, %v25_v6  ;;  %1347 = vmatpush3.msra.mxu1 %v88_v5 }
   0xd   :  { %1234 = vmatprep.mubr.msk.f32.mxu0 %vm100_vm1, %v26_v7  ;;  %1297 = vmatprep.mubr.msk.f32.mxu1 %vm100_vm1, %v68_v8 }
   0xe   :  { %1298 = vmatmul.mubr.msk.f32.vlgmr.msra.gmra.mxu1 %vm100_vm1, %v69_v10 }
   0xf   :  { %1300 = vmatprep.mubr.msk.f32.mxu1 %vm100_vm1, %v70_v11 }
  0x10   :  { %1235 = vmatmul.mubr.msk.f32.gmra.mxu0 %vm100_vm1, %v27_v9 }
  0x11   :  { %1237 = vmatprep.mubr.msk.f32.mxu0 %vm100_vm1, %v28_v12 }
  0x12   :  { %1301 = vmatmul.mubr.msk.f32.gmra.mxu1 %vm100_vm1, %v71_v13 }
  0x13   :  { %1303 = vmatprep.mubr.msk.f32.mxu1 %vm100_vm1, %v72_v14 }
  0x14   :  { %1238 = vmatmul.mubr.msk.f32.gmra.mxu0 %vm100_vm1, %v29_v15 }
  0x15   :  { %1240 = vmatprep.mubr.msk.f32.mxu0 %vm100_vm1, %v30_v16 }
  0x16   :  { %1304 = vmatmul.mubr.msk.f32.gmra.mxu1 %vm100_vm1, %v73_v17 }
  0x17   :  { %1306 = vmatprep.mubr.msk.f32.mxu1 %vm100_vm1, %v74_v18 }
  0x18   :  { %1241 = vmatmul.mubr.msk.f32.gmra.mxu0 %vm100_vm1, %v31_v19 }
  0x19   :  { %11 = vsyncpa [#allocation3], 0  ;;  %1243 = vmatprep.mubr.msk.f32.mxu0 %vm100_vm1, %v32_v20  ;;  %v33_v23 = vld [vmem:[%s1908_s0 + $0x48] sm:$0xff]  ;;  %v34_v24 = vld [vmem:[%s1908_s0 + $0x50] sm:$0xff]  ;;  %v1375_v5 = vmov 1983009808   ;;  %v752_v7 = vlaneseq }
  0x1a   :  { %1307 = vmatmul.mubr.msk.f32.gmra.mxu1 %vm100_vm1, %v75_v21  ;;  %v77_v25 = vld [vmem:[%s1908_s0 + $0x1a8] sm:$0xff]  ;;  %v78_v26 = vld [vmem:[%s1908_s0 + $0x1b0] sm:$0xff]  ;;  %v35_v27 = vld [vmem:[%s1908_s0 + $0x58] sm:$0xff]  ;;  %v750_v6 = vunpack.c.l.s4 %v1375_v5  ;;  %vm1377_vm2 = vmmov 0   ;;  %vm920_vm3 = vcmask 261120   ;;  %s1378_s20 = smov [#allocation2]  }
  0x1b   :  { %1309 = vmatprep.mubr.msk.f32.mxu1 %vm100_vm1, %v76_v22  ;;  %v36_v28 = vld [vmem:[%s1908_s0 + $0x60] sm:$0xff]  ;;  %v79_v29 = vld [vmem:[%s1908_s0 + $0x1b8] sm:$0xff]  ;;  %v37_v31 = vld [vmem:[%s1908_s0 + $0x68] sm:$0xff]  ;;  %v753_v9 = vshrl.u32 %v752_v7, 7  ;;  %s1001_s21 = sshll.u32 %s1378_s20, 4  ;;  %s1002_s21 = int_to_ptr.vmem [resolvable:$true] %s1001_s21 }
  0x1c   :  { %1244 = vmatmul.mubr.msk.f32.gmra.mxu0 %vm100_vm1, %v33_v23  ;;  %v80_v30 = vld [vmem:[%s1908_s0 + $0x1c0] sm:$0xff]  ;;  %v38_v32 = vld [vmem:[%s1908_s0 + $0x70] sm:$0xff]  ;;  %v81_v33 = vld [vmem:[%s1908_s0 + $0x1c8] sm:$0xff]  ;;  %v751_v8 = vunpack.c.0.s8 %v750_v6  ;;  %p1358_p1 = scmp.lt.s32.totalorder %s1002_s21, %s1002_s21 }
  0x1d   :  { %1246 = vmatprep.mubr.msk.f32.mxu0 %vm100_vm1, %v34_v24  ;;  %v82_v34 = vld [vmem:[%s1908_s0 + $0x1d0] sm:$0xff]  ;;  %v39_v35 = vld [vmem:[%s1908_s0 + $0x78] sm:$0xff]  ;;  %v40_v36 = vld [vmem:[%s1908_s0 + $0x80] sm:$0xff] }
  0x1e   :  { %1310 = vmatmul.mubr.msk.f32.gmra.mxu1 %vm100_vm1, %v77_v25  ;;  %v83_v37 = vld [vmem:[%s1908_s0 + $0x1d8] sm:$0xff]  ;;  %v84_v38 = vld [vmem:[%s1908_s0 + $0x1e0] sm:$0xff]  ;;  %v41_v39 = vld [vmem:[%s1908_s0 + $0x88] sm:$0xff]  ;;  %v754_v10 = vsub.s32 %v751_v8, %v753_v9 }
  0x1f   :  { %1312 = vmatprep.mubr.msk.f32.mxu1 %vm100_vm1, %v78_v26  ;;  %v42_v40 = vld [vmem:[%s1908_s0 + $0x90] sm:$0xff]  ;;  %v85_v41 = vld [vmem:[%s1908_s0 + $0x1e8] sm:$0xff]  ;;  %v43_v43 = vld [vmem:[%s1908_s0 + $0x98] sm:$0xff] }
  0x20   :  { %1247 = vmatmul.mubr.msk.f32.gmra.mxu0 %vm100_vm1, %v35_v27  ;;  %v86_v42 = vld [vmem:[%s1908_s0 + $0x1f0] sm:$0xff]  ;;  %v44_v44 = vld [vmem:[%s1908_s0 + $0xa0] sm:$0xff]  ;;  %v87_v45 = vld [vmem:[%s1908_s0 + $0x1f8] sm:$0xff] }
  0x21   :  { %1249 = vmatprep.mubr.msk.f32.mxu0 %vm100_vm1, %v36_v28  ;;  %v45_v46 = vld [vmem:[%s1908_s0 + $0xa8] sm:$0xff]  ;;  %v46_v47 = vld [vmem:[%s1908_s0 + $0xb0] sm:$0xff]  ;;  %v47_v48 = vld [vmem:[%s1908_s0 + $0xb8] sm:$0xff] }
  0x22   :  { %1313 = vmatmul.mubr.msk.f32.gmra.mxu1 %vm100_vm1, %v79_v29  ;;  %v48_v49 = vld [vmem:[%s1908_s0 + $0xc0] sm:$0xff]  ;;  %v49_v50 = vld [vmem:[%s1908_s0 + $0xc8] sm:$0xff]  ;;  %v50_v51 = vld [vmem:[%s1908_s0 + $0xd0] sm:$0xff] }
  0x23   :  { %1315 = vmatprep.mubr.msk.f32.mxu1 %vm100_vm1, %v80_v30  ;;  %v51_v52 = vld [vmem:[%s1908_s0 + $0xd8] sm:$0xff]  ;;  %v52_v53 = vld [vmem:[%s1908_s0 + $0xe0] sm:$0xff]  ;;  %v53_v54 = vld [vmem:[%s1908_s0 + $0xe8] sm:$0xff] }
  0x24   :  { %1250 = vmatmul.mubr.msk.f32.gmra.mxu0 %vm100_vm1, %v37_v31  ;;  %v54_v55 = vld [vmem:[%s1908_s0 + $0xf0] sm:$0xff]  ;;  %v55_v56 = vld [vmem:[%s1908_s0 + $0xf8] sm:$0xff]  ;;  %v56_v57 = vld [vmem:[%s1908_s0 + $0x100] sm:$0xff] }
  0x25   :  { %1252 = vmatprep.mubr.msk.f32.mxu0 %vm100_vm1, %v38_v32  ;;  %v57_v58 = vld [vmem:[%s1908_s0 + $0x108] sm:$0xff]  ;;  %v58_v59 = vld [vmem:[%s1908_s0 + $0x110] sm:$0xff]  ;;  %v59_v60 = vld [vmem:[%s1908_s0 + $0x118] sm:$0xff] }
  0x26   :  { %1316 = vmatmul.mubr.msk.f32.gmra.mxu1 %vm100_vm1, %v81_v33  ;;  %v60_v61 = vld [vmem:[%s1908_s0 + $0x120] sm:$0xff]  ;;  %v61_v62 = vld [vmem:[%s1908_s0 + $0x128] sm:$0xff]  ;;  %v62_v63 = vld [vmem:[%s1908_s0 + $0x130] sm:$0xff] }
  0x27   :  { %1318 = vmatprep.mubr.msk.f32.mxu1 %vm100_vm1, %v82_v34  ;;  %v63_v0 = vld [vmem:[%s1908_s0 + $0x138] sm:$0xff]  ;;  %v64_v1 = vld [vmem:[%s1908_s0 + $0x140] sm:$0xff]  ;;  %v65_v2 = vld [vmem:[%s1908_s0 + $0x148] sm:$0xff] }
  0x28   :  { %1253 = vmatmul.mubr.msk.f32.gmra.mxu0 %vm100_vm1, %v39_v35  ;;  %v66_v3 = vld [vmem:[%s1908_s0 + $0x150] sm:$0xff]  ;;  %v67_v4 = vld [vmem:[%s1908_s0 + $0x158] sm:$0xff]  ;;  %v746_v11 = vld [vmem:[%s1911_s3] sm:$0xff] }
  0x29   :  { %1255 = vmatprep.mubr.msk.f32.mxu0 %vm100_vm1, %v40_v36  ;;  %v1688_v12 = vrot.slane %v746_v11, %v754_v10  ;;  %v748_v14 = vcombine.high %v746_v11, %v746_v11 }
  0x2a   :  { %1319 = vmatmul.mubr.msk.f32.gmra.mxu1 %vm100_vm1, %v83_v37 }
  0x2b   :  { %1321 = vmatprep.mubr.msk.f32.mxu1 %vm100_vm1, %v84_v38  ;;  %v763_v13 = vcombine.high %v1688_v12, %v1688_v12  ;;  %v1692_v15 = vrot.slane %v748_v14, %v754_v10 }
  0x2c   :  { %1256 = vmatmul.mubr.msk.f32.gmra.mxu0 %vm100_vm1, %v41_v39 }
  0x2d   :  { %1258 = vmatprep.mubr.msk.f32.mxu0 %vm100_vm1, %v42_v40 }
  0x2e   :  { %1322 = vmatmul.mubr.msk.f32.gmra.mxu1 %vm100_vm1, %v85_v41 }
  0x2f   :  { %1324 = vmatprep.mubr.msk.f32.mxu1 %vm100_vm1, %v86_v42 }
  0x30   :  { %1259 = vmatmul.mubr.msk.f32.gmra.mxu0 %vm100_vm1, %v43_v43 }
  0x31   :  { %1261 = vmatprep.mubr.msk.f32.mxu0 %vm100_vm1, %v44_v44 }
  0x32   :  { %1325 = vmatmul.mubr.msk.f32.gmra.mxu1 %vm100_vm1, %v87_v45 }
  0x33   :  { %833 = vmatprep.mubr.f32.mxu1 %v763_v13 }
  0x34   :  { %1262 = vmatmul.mubr.msk.f32.gmra.mxu0 %vm100_vm1, %v45_v46 }
  0x35   :  { %1264 = vmatprep.mubr.msk.f32.mxu0 %vm100_vm1, %v46_v47 }
  0x38   :  { %1265 = vmatmul.mubr.msk.f32.gmra.mxu0 %vm100_vm1, %v47_v48 }
  0x39   :  { %1267 = vmatprep.mubr.msk.f32.mxu0 %vm100_vm1, %v48_v49 }
  0x3c   :  { %1268 = vmatmul.mubr.msk.f32.gmra.mxu0 %vm100_vm1, %v49_v50 }
  0x3d   :  { %1270 = vmatprep.mubr.msk.f32.mxu0 %vm100_vm1, %v50_v51 }
  0x40   :  { %1271 = vmatmul.mubr.msk.f32.gmra.mxu0 %vm100_vm1, %v51_v52 }
  0x41   :  { %1273 = vmatprep.mubr.msk.f32.mxu0 %vm100_vm1, %v52_v53 }
  0x44   :  { %1274 = vmatmul.mubr.msk.f32.gmra.mxu0 %vm100_vm1, %v53_v54 }
  0x45   :  { %1276 = vmatprep.mubr.msk.f32.mxu0 %vm100_vm1, %v54_v55 }
  0x48   :  { %1277 = vmatmul.mubr.msk.f32.gmra.mxu0 %vm100_vm1, %v55_v56 }
  0x49   :  { %1279 = vmatprep.mubr.msk.f32.mxu0 %vm100_vm1, %v56_v57 }
  0x4c   :  { %1280 = vmatmul.mubr.msk.f32.gmra.mxu0 %vm100_vm1, %v57_v58  ;;  %v1755_v58 = vld [vmem:[%s1910_s2] ss:$0 sm:$0xff] }
  0x4d   :  { %1282 = vmatprep.mubr.msk.f32.mxu0 %vm100_vm1, %v58_v59 }
  0x50   :  { %1283 = vmatmul.mubr.msk.f32.gmra.mxu0 %vm100_vm1, %v59_v60 }
  0x51   :  { %1285 = vmatprep.mubr.msk.f32.mxu0 %vm100_vm1, %v60_v61 }
  0x54   :  { %1286 = vmatmul.mubr.msk.f32.gmra.mxu0 %vm100_vm1, %v61_v62 }
  0x55   :  { %1288 = vmatprep.mubr.msk.f32.mxu0 %vm100_vm1, %v62_v63 }
  0x58   :  { %1289 = vmatmul.mubr.msk.f32.gmra.mxu0 %vm100_vm1, %v63_v0 }
  0x59   :  { %1291 = vmatprep.mubr.msk.f32.mxu0 %vm100_vm1, %v64_v1 }
  0x5c   :  { %1292 = vmatmul.mubr.msk.f32.gmra.mxu0 %vm100_vm1, %v65_v2 }
  0x5d   :  { %1294 = vmatprep.mubr.msk.f32.mxu0 %vm100_vm1, %v66_v3 }
  0x60   :  { %1295 = vmatmul.mubr.msk.f32.gmra.mxu0 %vm100_vm1, %v67_v4 }
  0xcc   :  { %v1694_v16 = vpop.f32.mrf.mxu0 }
  0xce   :  { %v1696_v17 = vpop.f32.mrf.mxu0  ;;  %v1710_v24 = vpop.f32.mrf.mxu1 }
  0xd0   :  { %v1698_v18 = vpop.f32.mrf.mxu0  ;;  %v1716_v27 = vpop.f32.mrf.mxu1 }
  0xd2   :  { %v1700_v19 = vpop.f32.mrf.mxu0  ;;  %v1718_v30 = vpop.f32.mrf.mxu1 }
  0xd4   :  { %v1702_v20 = vpop.f32.mrf.mxu0  ;;  %v1720_v33 = vpop.f32.mrf.mxu1 }
  0xd6   :  { %v1704_v21 = vpop.f32.mrf.mxu0  ;;  %v1722_v36 = vpop.f32.mrf.mxu1 }
  0xd8   :  { %v1706_v22 = vpop.f32.mrf.mxu0  ;;  %v1728_v39 = vpop.f32.mrf.mxu1 }
  0xda   :  { %v1708_v23 = vpop.f32.mrf.mxu0  ;;  %v1734_v42 = vpop.f32.mrf.mxu1 }
  0xdc   :  { %v1712_v25 = vpop.f32.mrf.mxu0  ;;  %v1740_v45 = vpop.f32.mrf.mxu1 }
  0xde   :  { %v1714_v26 = vpop.f32.mrf.mxu0  ;;  %v1744_v48 = vpop.f32.mrf.mxu1 }
  0xe0   :  { %v1248_v28 = vpop.f32.mrf.mxu0  ;;  %v1746_v51 = vpop.f32.mrf.mxu1 }
  0xe2   :  { %v413_v29 = vpop.f32.mrf.mxu0  ;;  %v1748_v54 = vpop.f32.mrf.mxu1 }
  0xe4   :  { %v1251_v31 = vpop.f32.mrf.mxu0  ;;  %v1750_v57 = vpop.f32.mrf.mxu1 }
  0xe5   :  { %v429_v4 = vadd.f32 %v1251_v31, %v1755_v58  ;;  %v419_v31 = vadd.f32 %v1248_v28, %v1755_v58  ;;  %v409_v28 = vadd.f32 %v1712_v25, %v1755_v58 }
  0xe6   :  { %v423_v32 = vpop.f32.mrf.mxu0  ;;  %v1760_v0 = vpop.f32.mrf.mxu1 }
  0xe7   :  { %v424_v9 = vadd.f32 %v1755_v58, %v423_v32  ;;  %v414_v32 = vadd.f32 %v1755_v58, %v413_v29 }
  0xe8   :  { %v1254_v34 = vpop.f32.mrf.mxu0  ;;  %v1769_v11 = vpop.f32.mrf.mxu1 }
  0xe9   :  { %v439_v59 = vadd.f32 %v1254_v34, %v1755_v58 }
  0xea   :  { %v433_v35 = vpop.f32.mrf.mxu0 }
  0xeb   :  { %v434_v62 = vadd.f32 %v1755_v58, %v433_v35  ;;  %v697_v5 = vmax.f32 %v439_v59, 0.0  ;;  %v695_v35 = vmax.f32 %v429_v4, 0.0  ;;  %v692_v4 = vmax.f32 %v414_v32, 0.0 }
  0xec   :  { %v1724_v37 = vpop.f32.mrf.mxu0 }
  0xed   :  { %v696_v10 = vmax.f32 %v434_v62, 0.0 }
  0xee   :  { %v1726_v38 = vpop.f32.mrf.mxu0 }
  0xf0   :  { %v1730_v40 = vpop.f32.mrf.mxu0 }
  0xf2   :  { %v1732_v41 = vpop.f32.mrf.mxu0 }
  0xf4   :  { %v1736_v43 = vpop.f32.mrf.mxu0 }
  0xf6   :  { %v1738_v44 = vpop.f32.mrf.mxu0 }
  0xf8   :  { %v1266_v46 = vpop.f32.mrf.mxu0 }
  0xfa   :  { %v1742_v47 = vpop.f32.mrf.mxu0 }
  0xfc   :  { %v1269_v49 = vpop.f32.mrf.mxu0 }
  0xfe   :  { %v483_v50 = vpop.f32.mrf.mxu0 }
 0x100   :  { %v1272_v52 = vpop.f32.mrf.mxu0 }
 0x101   :  { %v499_v14 = vadd.f32 %v1272_v52, %v1755_v58  ;;  %v489_v52 = vadd.f32 %v1269_v49, %v1755_v58  ;;  %v479_v49 = vadd.f32 %v1266_v46, %v1755_v58 }
 0x102   :  { %v493_v53 = vpop.f32.mrf.mxu0 }
 0x104   :  { %v1275_v55 = vpop.f32.mrf.mxu0 }
 0x105   :  { %v509_v1 = vadd.f32 %v1275_v55, %v1755_v58 }
 0x106   :  { %v503_v56 = vpop.f32.mrf.mxu0 }
 0x107   :  { %v504_v7 = vadd.f32 %v1755_v58, %v503_v56  ;;  %v711_v34 = vmax.f32 %v509_v1, 0.0  ;;  %v494_v56 = vadd.f32 %v1755_v58, %v493_v53  ;;  %v693_v1 = vmax.f32 %v419_v31, 0.0 }
 0x108   :  { %v1278_v60 = vpop.f32.mrf.mxu0  ;;  %v705_v31 = vmax.f32 %v479_v49, 0.0 }
 0x109   :  { %v519_v61 = vadd.f32 %v1278_v60, %v1755_v58  ;;  %v710_v59 = vmax.f32 %v504_v7, 0.0  ;;  %v694_v60 = vmax.f32 %v424_v9, 0.0  ;;  %v708_v29 = vmax.f32 %v494_v56, 0.0 }
 0x10a   :  { %v513_v63 = vpop.f32.mrf.mxu0  ;;  %v707_v7 = vmax.f32 %v489_v52, 0.0  ;;  %v691_v9 = vmax.f32 %v409_v28, 0.0 }
 0x10b   :  { %v713_v2 = vmax.f32 %v519_v61, 0.0  ;;  %v514_v3 = vadd.f32 %v1755_v58, %v513_v63  ;;  %v1779_v61 = vpop.f32.mrf.mxu1  ;;  %v709_v63 = vmax.f32 %v499_v14, 0.0 }
 0x10c   :  { %v1765_v6 = vpop.f32.mrf.mxu0 }
 0x10d   :  { %v712_v8 = vmax.f32 %v514_v3, 0.0  ;;  %1146 = vmatprep.subr.mxu1 %v713_v2  ;;  %v484_v2 = vadd.f32 %v1755_v58, %v483_v50  ;;  %v404_v3 = vadd.f32 %v1755_v58, %v1714_v26  ;;  %v474_v50 = vadd.f32 %v1755_v58, %v1742_v47 }
 0x10e   :  { %1147 = vmatpush3.msra.mxu1 %v697_v5  ;;  %v1771_v13 = vpop.f32.mrf.mxu0  ;;  %v1791_v5 = vpop.f32.mrf.mxu1  ;;  %v394_v26 = vadd.f32 %v1755_v58, %v1708_v23  ;;  %v464_v47 = vadd.f32 %v1755_v58, %v1738_v44  ;;  %v384_v23 = vadd.f32 %v1755_v58, %v1704_v21  ;;  %v454_v44 = vadd.f32 %v1755_v58, %v1732_v41 }
 0x10f   :  { %1148 = vmatprep.subr.mxu1 %v712_v8  ;;  %v399_v8 = vadd.f32 %v1706_v22, %v1755_v58  ;;  %v690_v14 = vmax.f32 %v404_v3, 0.0  ;;  %v389_v22 = vadd.f32 %v1702_v20, %v1755_v58  ;;  %v379_v20 = vadd.f32 %v1698_v18, %v1755_v58 }
 0x110   :  { %1149 = vmatpush3.msra.mxu1 %v696_v10  ;;  %v1775_v55 = vpop.f32.mrf.mxu0  ;;  %v706_v10 = vmax.f32 %v484_v2, 0.0  ;;  %v1323_v46 = vpop.f32.mrf.mxu1  ;;  %v688_v32 = vmax.f32 %v394_v26, 0.0  ;;  %v374_v21 = vadd.f32 %v1755_v58, %v1700_v19  ;;  %v686_v2 = vmax.f32 %v384_v23, 0.0 }
 0x111   :  { %1150 = vmatprep.subr.mxu1 %v711_v34  ;;  %v469_v34 = vadd.f32 %v1736_v43, %v1755_v58  ;;  %v689_v56 = vmax.f32 %v399_v8, 0.0  ;;  %v687_v28 = vmax.f32 %v389_v22, 0.0  ;;  %v369_v18 = vadd.f32 %v1694_v16, %v1755_v58 }
 0x112   :  { %1151 = vmatpush3.msra.mxu1 %v695_v35  ;;  %v1781_v62 = vpop.f32.mrf.mxu0  ;;  %v663_v43 = vpop.f32.mrf.mxu1  ;;  %v685_v49 = vmax.f32 %v379_v20, 0.0  ;;  %v444_v41 = vadd.f32 %v1755_v58, %v1726_v38  ;;  %v364_v8 = vadd.f32 %v1755_v58, %v1696_v17  ;;  %v599_v16 = vadd.f32 %v1718_v30, %v1755_v58 }
 0x113   :  { %1152 = vmatprep.subr.mxu1 %v710_v59  ;;  %v704_v59 = vmax.f32 %v474_v50, 0.0  ;;  %v703_v52 = vmax.f32 %v469_v34, 0.0  ;;  %v683_v26 = vmax.f32 %v369_v18, 0.0  ;;  %v594_v17 = vadd.f32 %v1755_v58, %v1720_v33 }
 0x114   :  { %1153 = vmatpush3.msra.mxu1 %v694_v60  ;;  %v1786_v53 = vpop.f32.mrf.mxu0  ;;  %v459_v60 = vadd.f32 %v1730_v40, %v1755_v58  ;;  %v1326_v40 = vpop.f32.mrf.mxu1  ;;  %v764_v22 = vcombine.high %v1692_v15, %v1692_v15  ;;  %v589_v30 = vadd.f32 %v1710_v24, %v1755_v58  ;;  %v664_v23 = vadd.f32 %v1755_v58, %v663_v43 }
 0x115   :  { %1154 = vmatprep.subr.mxu1 %v709_v63  ;;  %v679_v19 = vadd.f32 %v1326_v40, %v1755_v58  ;;  %v584_v33 = vadd.f32 %v1755_v58, %v1716_v27  ;;  %v654_v43 = vadd.f32 %v1755_v58, %v1791_v5  ;;  %v644_v40 = vadd.f32 %v1755_v58, %v1769_v11 }
 0x116   :  { %1155 = vmatpush3.msra.mxu1 %v693_v1  ;;  %v1794_v25 = vpop.f32.mrf.mxu0  ;;  %v702_v1 = vmax.f32 %v464_v47, 0.0  ;;  %v701_v3 = vmax.f32 %v459_v60, 0.0  ;;  %v728_v60 = vmax.f32 %v594_v17, 0.0  ;;  %v639_v18 = vadd.f32 %v1748_v54, %v1755_v58 }
 0x117   :  { %1156 = vmatprep.subr.mxu1 %v708_v29  ;;  %v449_v29 = vadd.f32 %v1724_v37, %v1755_v58  ;;  %v673_v37 = vpop.f32.mrf.mxu1  ;;  %v745_v38 = vmax.f32 %v679_v19, 0.0  ;;  %v738_v11 = vmax.f32 %v644_v40, 0.0  ;;  %v629_v54 = vadd.f32 %v1744_v48, %v1755_v58 }
 0x118   :  { %1157 = vmatpush3.msra.mxu1 %v692_v4  ;;  %v1804_v35 = vpop.f32.mrf.mxu0  ;;  %v674_v34 = vadd.f32 %v1755_v58, %v673_v37  ;;  %v619_v48 = vadd.f32 %v1734_v42, %v1755_v58  ;;  %v609_v42 = vadd.f32 %v1722_v36, %v1755_v58 }
 0x119   :  { %1158 = vmatprep.subr.mxu1 %v707_v7  ;;  %v700_v7 = vmax.f32 %v454_v44, 0.0  ;;  %v699_v50 = vmax.f32 %v449_v29, 0.0  ;;  %v726_v44 = vmax.f32 %v584_v33, 0.0  ;;  %v740_v29 = vmax.f32 %v654_v43, 0.0 }
 0x11a   :  { %1159 = vmatpush3.msra.mxu1 %v691_v9  ;;  %v1814_v63 = vpop.f32.mrf.mxu0  ;;  %v684_v9 = vmax.f32 %v374_v21, 0.0  ;;  %v649_v21 = vadd.f32 %v1760_v0, %v1755_v58  ;;  %v559_v0 = vadd.f32 %v1804_v35, %v1755_v58  ;;  %v549_v35 = vadd.f32 %v1786_v53, %v1755_v58 }
 0x11b   :  { %1160 = vmatprep.subr.mxu1 %v706_v10  ;;  %v539_v53 = vadd.f32 %v1775_v55, %v1755_v58  ;;  %v529_v55 = vadd.f32 %v1765_v6, %v1755_v58  ;;  %v911_v6 = vld [vmem:[%s1912_s4 + $0x10] sm:$0xff] }
 0x11c   :  { %1161 = vmatpush3.msra.mxu1 %v690_v14  ;;  %v1293_v4 = vpop.f32.mrf.mxu0  ;;  %v698_v14 = vmax.f32 %v444_v41, 0.0 }
 0x11d   :  { %1162 = vmatprep.subr.mxu1 %v705_v31  ;;  %v682_v31 = vmax.f32 %v364_v8, 0.0  ;;  %v737_v8 = vmax.f32 %v639_v18, 0.0  ;;  %v715_v36 = vmax.f32 %v529_v55, 0.0 }
 0x11e   :  { %1163 = vmatpush3.msra.mxu1 %v689_v56  ;;  %v563_v10 = vpop.f32.mrf.mxu0  ;;  %v669_v56 = vadd.f32 %v1323_v46, %v1755_v58 }
 0x11f   :  { %1164 = vmatprep.subr.mxu1 %v704_v59  ;;  %v729_v59 = vmax.f32 %v599_v16, 0.0  ;;  %v564_v5 = vadd.f32 %v1755_v58, %v563_v10  ;;  %v735_v10 = vmax.f32 %v629_v54, 0.0 }
 0x120   :  { %1165 = vmatpush3.msra.mxu1 %v688_v32  ;;  %v1296_v47 = vpop.f32.mrf.mxu0  ;;  %v744_v32 = vmax.f32 %v674_v34, 0.0  ;;  %v743_v24 = vmax.f32 %v669_v56, 0.0  ;;  %v717_v34 = vmax.f32 %v539_v53, 0.0 }
 0x121   :  { %1166 = vmatprep.subr.mxu1 %v703_v52  ;;  %v579_v46 = vadd.f32 %v1296_v47, %v1755_v58  ;;  %v659_v52 = vadd.f32 %v1779_v61, %v1755_v58  ;;  %v569_v61 = vadd.f32 %v1293_v4, %v1755_v58  ;;  %v634_v4 = vadd.f32 %v1755_v58, %v1750_v57 }
 0x122   :  { %1167 = vmatpush3.msra.mxu1 %v687_v28  ;;  %v573_v20 = vpop.f32.mrf.mxu0  ;;  %v727_v28 = vmax.f32 %v589_v30, 0.0  ;;  %v722_v19 = vmax.f32 %v564_v5, 0.0  ;;  %v624_v57 = vadd.f32 %v1755_v58, %v1746_v51  ;;  %v614_v51 = vadd.f32 %v1755_v58, %v1740_v45 }
 0x123   :  { %1168 = vmatprep.subr.mxu1 %v702_v1  ;;  %v725_v27 = vmax.f32 %v579_v46, 0.0  ;;  %v574_v1 = vadd.f32 %v1755_v58, %v573_v20  ;;  %v723_v41 = vmax.f32 %v569_v61, 0.0  ;;  %v736_v37 = vmax.f32 %v634_v4, 0.0 }
 0x124   :  { %1169 = vmatpush3.msra.mxu1 %v686_v2  ;;  %v741_v2 = vmax.f32 %v659_v52, 0.0  ;;  %v734_v16 = vmax.f32 %v624_v57, 0.0  ;;  %v604_v45 = vadd.f32 %v1755_v58, %v1728_v39  ;;  %v1376_v39 = vmov 0.0   ;;  %v1075_v52 = vld [vmem:[%s1913_s5] ss:$0 sm:$0xff] }
 0x125   :  { %1170 = vmatprep.subr.mxu1 %v701_v3  ;;  %v724_v3 = vmax.f32 %v574_v1, 0.0 }
 0x126   :  { %1171 = vmatpush3.msra.mxu1 %v685_v49  ;;  %v739_v49 = vmax.f32 %v649_v21, 0.0  ;;  %v730_v56 = vmax.f32 %v604_v45, 0.0 }
 0x127   :  { %1172 = vmatprep.subr.mxu1 %v700_v7  ;;  %v554_v7 = vadd.f32 %v1755_v58, %v1814_v63  ;;  %v544_v63 = vadd.f32 %v1755_v58, %v1794_v25  ;;  %v534_v25 = vadd.f32 %v1755_v58, %v1781_v62  ;;  %v524_v62 = vadd.f32 %v1755_v58, %v1771_v13  ;;  %v912_v58 = vld [vmem:[%s1912_s4 + $0x18] sm:$0xff]  ;;  %v910_v13 = vld [vmem:[%s1912_s4 + $0x8] sm:$0xff] }
 0x128   :  { %1173 = vmatpush3.msra.mxu1 %v684_v9  ;;  %v721_v9 = vmax.f32 %v559_v0, 0.0 }
 0x129   :  { %1174 = vmatprep.subr.mxu1 %v699_v50  ;;  %v720_v50 = vmax.f32 %v554_v7, 0.0  ;;  %v716_v17 = vmax.f32 %v534_v25, 0.0  ;;  %v714_v47 = vmax.f32 %v524_v62, 0.0 }
 0x12a   :  { %1175 = vmatpush3.msra.mxu1 %v683_v26  ;;  %v719_v26 = vmax.f32 %v549_v35, 0.0 }
 0x12b   :  { %1176 = vmatprep.subr.mxu1 %v698_v14  ;;  %v718_v14 = vmax.f32 %v544_v63, 0.0 }
 0x12c   :  { %1177 = vmatpush3.msra.mxu1 %v682_v31  ;;  %v732_v31 = vmax.f32 %v614_v51, 0.0 }
 0x12d   :  { %1181 = vmatprep.subr.mxu1 %v745_v38  ;;  %834 = vmatmul.mubr.f32.vlgmr.msra.gmra.mxu1 %v1688_v12  ;;  %v742_v12 = vmax.f32 %v664_v23, 0.0  ;;  %v733_v38 = vmax.f32 %v619_v48, 0.0 }
 0x12e   :  { %1182 = vmatpush3.msra.mxu1 %v729_v59  ;;  %903 = vmatprep.mubr.f32.mxu1 %v764_v22  ;;  %v731_v22 = vmax.f32 %v609_v42, 0.0 }
 0x12f   :  { %1183 = vmatprep.subr.mxu1 %v744_v32 }
 0x130   :  { %1184 = vmatpush3.msra.mxu1 %v728_v60 }
 0x131   :  { %1185 = vmatprep.subr.mxu1 %v743_v24 }
 0x132   :  { %1186 = vmatpush3.msra.mxu1 %v727_v28 }
 0x133   :  { %1187 = vmatprep.subr.mxu1 %v742_v12 }
 0x134   :  { %1188 = vmatpush3.msra.mxu1 %v726_v44 }
 0x135   :  { %1189 = vmatprep.subr.mxu1 %v741_v2 }
 0x136   :  { %1190 = vmatpush3.msra.mxu1 %v725_v27 }
 0x137   :  { %1191 = vmatprep.subr.mxu1 %v740_v29 }
 0x138   :  { %1192 = vmatpush3.msra.mxu1 %v724_v3 }
 0x139   :  { %1193 = vmatprep.subr.mxu1 %v739_v49 }
 0x13a   :  { %1194 = vmatpush3.msra.mxu1 %v723_v41 }
 0x13b   :  { %1195 = vmatprep.subr.mxu1 %v738_v11 }
 0x13c   :  { %1196 = vmatpush3.msra.mxu1 %v722_v19 }
 0x13d   :  { %1197 = vmatprep.subr.mxu1 %v737_v8 }
 0x13e   :  { %1198 = vmatpush3.msra.mxu1 %v721_v9 }
 0x13f   :  { %1199 = vmatprep.subr.mxu1 %v736_v37 }
 0x140   :  { %1200 = vmatpush3.msra.mxu1 %v720_v50 }
 0x141   :  { %1201 = vmatprep.subr.mxu1 %v735_v10 }
 0x142   :  { %1202 = vmatpush3.msra.mxu1 %v719_v26 }
 0x143   :  { %1203 = vmatprep.subr.mxu1 %v734_v16 }
 0x144   :  { %1204 = vmatpush3.msra.mxu1 %v718_v14 }
 0x145   :  { %1205 = vmatprep.subr.mxu1 %v733_v38 }
 0x146   :  { %1206 = vmatpush3.msra.mxu1 %v717_v34 }
 0x147   :  { %1207 = vmatprep.subr.mxu1 %v732_v31 }
 0x148   :  { %1208 = vmatpush3.msra.mxu1 %v716_v17 }
 0x149   :  { %1209 = vmatprep.subr.mxu1 %v731_v22 }
 0x14a   :  { %1210 = vmatpush3.msra.mxu1 %v715_v36 }
 0x14b   :  { %1211 = vmatprep.subr.mxu1 %v730_v56 }
 0x14c   :  { %1212 = vmatpush3.msra.mxu1 %v714_v47 }
 0x14d   :  { %904 = vmatmul.mubr.f32.vlgmr.msra.gmra.mxu1 %v1692_v15  ;;  %1327 = vmatprep.subr.mxu1 %v1376_v39  ;;  %v909_v15 = vld [vmem:[%s1912_s4] sm:$0xff]  ;;  %s1353_s4 = scalar_lea.vmem %s1002_s21, 32 }
 0x14e   :  { %1328 = vmatpush3.msra.mxu1 %v912_v58  ;;  %1335 = vmatprep.mubr.msk.f32.mxu1 %vm1377_vm2, %v1376_v39  ;;  %p1354_p0 = scmp.ne.s32.totalorder %s1002_s21, %s1353_s4  ;;  %p1359_p2 = scmp.lt.s32.totalorder %s1353_s4, %s1353_s4 }
 0x14f   :  { %1329 = vmatprep.subr.mxu1 %v1376_v39 }
 0x150   :  { %1330 = vmatpush3.msra.mxu1 %v911_v6  ;;  %p1360_p3 = por %p1359_p2, %p1358_p1 }
 0x151   :  { %1331 = vmatprep.subr.mxu1 %v1376_v39 }
 0x152   :  { %1332 = vmatpush3.msra.mxu1 %v910_v13  ;;  %p1361_p4 = pnand %p1360_p3, %p1354_p0 }
 0x153   :  { %1333 = vmatprep.subr.mxu1 %v1376_v39 }
 0x154   :  { %1334 = vmatpush3.msra.mxu1 %v909_v15 }
 0x1ed   :  { %v1178_v30 = vpop.f32.mrf.mxu1 }
 0x1ef   :  { %v1179_v59 = vpop.f32.mrf.mxu1 }
 0x1f0   :  { %v1180_v33 = vadd.f32 %v1179_v59, %v1178_v30 }
 0x20d   :  { %v1213_v23 = vpop.f32.mrf.mxu1 }
 0x20f   :  { %v1214_v32 = vpop.f32.mrf.mxu1 }
 0x210   :  { %v1215_v60 = vadd.f32 %v1214_v32, %v1213_v23 }
 0x212   :  { %v906_v46 = vadd.f32 %v1215_v60, %v1180_v33 }
 0x214   :  { %1336 = vmatmul.mubr.msk.f32.vlgmr.msra.gmra.mxu1 %vm920_vm3, %v906_v46 }
 0x2d4   :  { %v990_v24 = vpop.f32.mrf.mxu1 }
 0x2d5   :  { %v991_v20 = vadd.f32 %v1075_v52, %v990_v24 }
 0x2d6   :  { %v1337_v28 = vpop.f32.mrf.mxu1 }
 0x2d7   :  { %994 = vst [vmem:[#allocation2] sm:$0x3] %v991_v20 }
 0x2d8   :  { %1364 = shalt.err (!%p1361_p4)
}
 0x2d9   :  { %1004 = dma.vmem_to_hbm [thread:$0]  %s1002_s21, 32, %s1914_s6, [#allocation3]  }
 0x2da   :  { %1373 = dma.done.wait [#allocation3], 32  }
 0x2db   :  { %1374 = vsyncadd [#allocation3], 4294967264 }
 0x2dc   :  { %1008 = vsyncpa [#allocation3], 1 }

</bundles_post_ra>
